<compile_context>
chip_gen: v7x
topology: tpu7x:2x2x1
jax: 0.10.0
libtpu: 0.0.40
codegen_flags: <defaults>
</compile_context>

<pallas_src>
import functools

import jax
import jax.numpy as jnp
from jax.experimental import pallas as pl
from jax.experimental.pallas import tpu as pltpu

CIFAR10_MEAN = (0.4914, 0.4822, 0.4465)
CIFAR10_STD = (0.2471, 0.2435, 0.2616)


def _round_up(n, m):
    return (n + m - 1) // m * m


def _vmem_capacity_bytes():
    try:
        return int(pltpu.get_tpu_info().vmem_capacity_bytes)
    except Exception:
        return 64 * 2**20  # conservative: v7x per-TensorCore VMEM


def _vmem_footprint(tile_b, tile_k, tile_nc, x_bytes, w_bytes):
    # Pallas allocates 2 pipeline buffers per BlockSpec by default, including
    # the (re-)resident weight/bias, so count everything at 2 buffers; the
    # accumulator scratch is single-buffered.
    return (2 * tile_b * tile_k * x_bytes          # activation stream
            + 2 * tile_k * tile_nc * w_bytes       # weight blocks
            + 2 * 2 * tile_k * 4                   # scale + shift
            + 2 * tile_nc * 4                      # bias
            + 2 * tile_b * tile_nc * 4             # output stream
            + tile_b * tile_nc * 4)                # f32 accumulator scratch


def _choose_tiles(B, D_pad, NC_pad, x_bytes, w_bytes, vmem_budget):
    # Class (lane) tile: 256 fills a v6e/v7x MXU pass; 128 is the floor for
    # tiny heads and is already optimal on v5e.
    tile_nc = 256 if (NC_pad % 256 == 0) else 128
    tile_nc = min(tile_nc, NC_pad)

    # Batch (sublane) tile: as large as the batch / VMEM allow; only smaller
    # than 128 when B itself is tiny.  Keep >= 2 batch steps when possible so
    # a v7x megacore can shard the "parallel" axis across both TensorCores.
    if B <= 128:
        tile_b = _round_up(B, 8)
    else:
        tile_b = min(512, _round_up(B, 128))
        while tile_b > 128 and (B + tile_b - 1) // tile_b < 2:
            tile_b //= 2

    def fits(tb, tk, tnc):
        return _vmem_footprint(tb, tk, tnc, x_bytes, w_bytes) <= vmem_budget

    # Contraction tile: largest multiple-of-128 divisor of D_pad that fits.
    m = D_pad // 128
    tile_k = 128
    for d in range(m, 0, -1):
        if m % d == 0 and fits(tile_b, 128 * d, tile_nc):
            tile_k = 128 * d
            break

    # Last resort under extreme VMEM pressure: shrink the batch tile, but not
    # below one MXU pass (128) unless B itself is smaller.
    floor_b = min(128, _round_up(B, 8))
    while not fits(tile_b, tile_k, tile_nc) and tile_b > floor_b:
        tile_b = max(floor_b, tile_b // 2)

    return tile_b, tile_k, tile_nc


def _norm_linear_kernel(x_ref, scale_ref, shift_ref, w_ref, b_ref, o_ref, acc_ref):
    """One (tile_b, tile_k) x-block: normalize on the VPU, bf16 dot on the MXU,
    accumulate in f32 scratch across the K grid axis."""
    k = pl.program_id(2)

    @pl.when(k == 0)
    def _():
        acc_ref[...] = jnp.zeros_like(acc_ref)

    # (x - mean) / std  ==  x * scale + shift  (free VALU work under the MXU dot)
    xn = x_ref[...] * scale_ref[...] + shift_ref[...]
    acc_ref[...] += jnp.dot(
        xn.astype(w_ref.dtype), w_ref[...], preferred_element_type=jnp.float32
    )

    @pl.when(k == pl.num_programs(2) - 1)
    def _():
        o_ref[...] = (acc_ref[...] + b_ref[...]).astype(o_ref.dtype)


def prepare_params(w, b, image_hw, weight_dtype=jnp.bfloat16):
    """One-time parameter prep (NOT per forward): pad the head to lane-aligned
    shapes, cast the weight for the MXU, build per-element norm scale/shift."""
    H, W = image_hw
    D, NC = w.shape
    C = D // (H * W)
    assert C * H * W == D and C == len(CIFAR10_MEAN)

    D_pad = _round_up(D, 128)
    NC_pad = _round_up(max(NC, 128), 128)

    mean = jnp.asarray(CIFAR10_MEAN, jnp.float32)
    std = jnp.asarray(CIFAR10_STD, jnp.float32)
    scale = jnp.repeat(1.0 / std, H * W)            # (D,) per-element 1/std
    shift = jnp.repeat(-mean / std, H * W)          # (D,) per-element -mean/std

    scale_pad = jnp.zeros((1, D_pad), jnp.float32).at[0, :D].set(scale)
    shift_pad = jnp.zeros((1, D_pad), jnp.float32).at[0, :D].set(shift)
    w_pad = (jnp.zeros((D_pad, NC_pad), jnp.float32).at[:D, :NC].set(w)
             .astype(weight_dtype))
    b_pad = jnp.zeros((1, NC_pad), jnp.float32).at[0, :NC].set(b)

    return dict(scale=scale_pad, shift=shift_pad, w=w_pad, b=b_pad)


def preprocessing_wrapper_forward(x_nchw, params, *, num_classes):
    """x_nchw: (B, C, H, W) f32 in [0,1]; params from prepare_params()."""
    B, C, H, W = x_nchw.shape
    D = C * H * W
    scale, shift, w, b = params["scale"], params["shift"], params["w"], params["b"]
    D_pad, NC_pad = w.shape

    x = x_nchw.reshape(B, D)          # same element order as torch .flatten(1)
    if D != D_pad:
        # TODO(synk): slow path only when D % 128 != 0 (non-CIFAR sizes); the
        # CIFAR fast path never copies the activation stream.
        x = jnp.zeros((B, D_pad), x.dtype).at[:, :D].set(x)

    x_bytes = x.dtype.itemsize
    w_bytes = w.dtype.itemsize

    vmem_cap = _vmem_capacity_bytes()
    tile_b, tile_k, tile_nc = _choose_tiles(
        B, D_pad, NC_pad, x_bytes, w_bytes, int(0.70 * vmem_cap))

    n_b = pl.cdiv(B, tile_b)
    n_nc = NC_pad // tile_nc
    n_k = D_pad // tile_k

    footprint = _vmem_footprint(tile_b, tile_k, tile_nc, x_bytes, w_bytes)
    vmem_limit = min(int(0.90 * vmem_cap), max(16 * 2**20, int(1.5 * footprint)))

    cost = pl.CostEstimate(
        flops=2 * n_b * tile_b * D_pad * NC_pad,
        transcendentals=0,
        bytes_accessed=(B * D_pad * x_bytes + D_pad * NC_pad * w_bytes
                        + B * NC_pad * 4 + 2 * D_pad * 4 + NC_pad * 4),
    )

    out = pl.pallas_call(
        _norm_linear_kernel,
        out_shape=jax.ShapeDtypeStruct((B, NC_pad), jnp.float32),
        grid_spec=pltpu.PrefetchScalarGridSpec(
            num_scalar_prefetch=0,
            grid=(n_b, n_nc, n_k),
            in_specs=[
                pl.BlockSpec((tile_b, tile_k), lambda i, j, k: (i, k)),    # x stream
                pl.BlockSpec((1, tile_k), lambda i, j, k: (0, k)),         # scale
                pl.BlockSpec((1, tile_k), lambda i, j, k: (0, k)),         # shift
                pl.BlockSpec((tile_k, tile_nc), lambda i, j, k: (k, j)),   # weight
                pl.BlockSpec((1, tile_nc), lambda i, j, k: (0, j)),        # bias
            ],
            out_specs=pl.BlockSpec((tile_b, tile_nc), lambda i, j, k: (i, j)),
            scratch_shapes=[pltpu.VMEM((tile_b, tile_nc), jnp.float32)],
        ),
        compiler_params=pltpu.CompilerParams(
            dimension_semantics=("parallel", "parallel", "arbitrary"),
            vmem_limit_bytes=vmem_limit,
        ),
        cost_estimate=cost,
    )(x, scale, shift, w, b)

    return out[:, :num_classes]


if __name__ == "__main__":
    key = jax.random.PRNGKey(0)
    k_x, k_w, k_b = jax.random.split(key, 3)

    B, C, H, W = 2, 3, 16, 16      # 3 channels required by the CIFAR-10 norm
    NUM_CLASSES = 10
    D = C * H * W

    # Inputs in [0, 1] like un-normalized images.
    x = jax.random.uniform(k_x, (B, C, H, W), dtype=jnp.float32)

    # Deterministic synthetic "model" parameters (linear classifier head).
    w = (jax.random.normal(k_w, (D, NUM_CLASSES), dtype=jnp.float32)
         * (1.0 / jnp.sqrt(D)))
    b = jax.random.normal(k_b, (NUM_CLASSES,), dtype=jnp.float32) * 0.01

    # One-time parameter prep (padding + bf16 cast) — outside the per-call path.
    params = prepare_params(w, b, (H, W), weight_dtype=jnp.bfloat16)

    fwd = jax.jit(functools.partial(preprocessing_wrapper_forward,
                                    num_classes=NUM_CLASSES))
    out = jax.block_until_ready(fwd(x, params))
    assert out.shape == (B, NUM_CLASSES)

    # Reference 1: same math with the intentional bf16 MXU cast (tight check).
    std_v = jnp.asarray(CIFAR10_STD, jnp.float32)
    mean_v = jnp.asarray(CIFAR10_MEAN, jnp.float32)
    scale_full = jnp.repeat(1.0 / std_v, H * W)
    shift_full = jnp.repeat(-mean_v / std_v, H * W)
    xn = x.reshape(B, D) * scale_full + shift_full
    ref_bf16 = (jnp.dot(xn.astype(jnp.bfloat16), w.astype(jnp.bfloat16),
                        preferred_element_type=jnp.float32) + b)
    assert jnp.allclose(out, ref_bf16, atol=2e-3, rtol=1e-2), "mismatch vs bf16 ref"

    # Reference 2: full f32 module semantics (looser tolerance for bf16 MXU path).
    mean4 = mean_v.reshape(1, 3, 1, 1)
    std4 = std_v.reshape(1, 3, 1, 1)
    ref_f32 = ((x - mean4) / std4).reshape(B, D) @ w + b
    assert jnp.allclose(out, ref_f32, atol=5e-2, rtol=5e-2), "mismatch vs f32 ref"

    print("KERNEL_OK")
</pallas_src>

<mosaic_0001>
module attributes {stable_mosaic.version = 11 : i64} {
  func.func @_norm_linear_kernel(%arg0: i32, %arg1: i32, %arg2: i32, %arg3: memref<8x768xf32, #tpu.memory_space<vmem>>, %arg4: memref<1x768xf32, #tpu.memory_space<vmem>>, %arg5: memref<1x768xf32, #tpu.memory_space<vmem>>, %arg6: memref<768x128xbf16, #tpu.memory_space<vmem>>, %arg7: memref<1x128xf32, #tpu.memory_space<vmem>>, %arg8: memref<8x128xf32, #tpu.memory_space<vmem>>, %arg9: memref<8x128xf32, #tpu.memory_space<vmem>>) attributes {dimension_semantics = [#tpu.dimension_semantics<parallel>, #tpu.dimension_semantics<parallel>, #tpu.dimension_semantics<arbitrary>], iteration_bounds = array<i64: 1, 1, 1>, scalar_prefetch = 0 : i64, scratch_operands = 1 : i64, tpu.core_type = #tpu.core_type<tc>, window_params = [{transform_indices = @transform_0, window_bounds = array<i64: 8, 768>}, {transform_indices = @transform_1, window_bounds = array<i64: 1, 768>}, {transform_indices = @transform_2, window_bounds = array<i64: 1, 768>}, {transform_indices = @transform_3, window_bounds = array<i64: 768, 128>}, {transform_indices = @transform_4, window_bounds = array<i64: 1, 128>}, {transform_indices = @transform_5, window_bounds = array<i64: 8, 128>}]} {
    %c0_i32 = arith.constant 0 : i32
    %0 = arith.cmpi eq, %arg2, %c0_i32 : i32
    %1 = arith.extui %0 : i1 to i32
    %c0_i32_0 = arith.constant 0 : i32
    %2 = arith.cmpi ne, %1, %c0_i32_0 : i32
    scf.if %2 {
      %cst_14 = arith.constant 0.000000e+00 : f32
      %19 = vector.broadcast %cst_14 : f32 to vector<8x128xf32>
      %c0_15 = arith.constant 0 : index
      %c0_16 = arith.constant 0 : index
      %20 = vector.load %arg9[%c0_15, %c0_16] : memref<8x128xf32, #tpu.memory_space<vmem>>, vector<8x128xf32>
      tpu.vector_store %arg9[%c0_15, %c0_16], %19 {strides = array<i32>} : memref<8x128xf32, #tpu.memory_space<vmem>>, vector<8x128xf32>,
    } else {
    }
    %c0 = arith.constant 0 : index
    %c0_1 = arith.constant 0 : index
    %3 = vector.load %arg3[%c0, %c0_1] : memref<8x768xf32, #tpu.memory_space<vmem>>, vector<8x768xf32>
    %c0_2 = arith.constant 0 : index
    %c0_3 = arith.constant 0 : index
    %4 = vector.load %arg4[%c0_2, %c0_3] : memref<1x768xf32, #tpu.memory_space<vmem>>, vector<1x768xf32>
    %5 = vector.broadcast %4 : vector<1x768xf32> to vector<8x768xf32>
    %6 = arith.mulf %3, %5 : vector<8x768xf32>
    %c0_4 = arith.constant 0 : index
    %c0_5 = arith.constant 0 : index
    %7 = vector.load %arg5[%c0_4, %c0_5] : memref<1x768xf32, #tpu.memory_space<vmem>>, vector<1x768xf32>
    %8 = vector.broadcast %7 : vector<1x768xf32> to vector<8x768xf32>
    %9 = arith.addf %6, %8 : vector<8x768xf32>
    %c0_6 = arith.constant 0 : index
    %c0_7 = arith.constant 0 : index
    %10 = vector.load %arg9[%c0_6, %c0_7] : memref<8x128xf32, #tpu.memory_space<vmem>>, vector<8x128xf32>
    %11 = arith.truncf %9 : vector<8x768xf32> to vector<8x768xbf16>
    %c0_8 = arith.constant 0 : index
    %c0_9 = arith.constant 0 : index
    %12 = vector.load %arg6[%c0_8, %c0_9] : memref<768x128xbf16, #tpu.memory_space<vmem>>, vector<768x128xbf16>
    %cst = arith.constant dense<0.000000e+00> : vector<8x128xf32>
    %13 = tpu.matmul %11, %12, %cst {dimension_numbers = #tpu.dot_dimension_numbers<[1], [0], [0], [1], [0, 0, 1, 1], [], []>} : vector<8x768xbf16>, vector<768x128xbf16>, vector<8x128xf32> -> vector<8x128xf32>
    %14 = arith.addf %10, %13 : vector<8x128xf32>
    %c0_10 = arith.constant 0 : index
    %c0_11 = arith.constant 0 : index
    %15 = vector.load %arg9[%c0_10, %c0_11] : memref<8x128xf32, #tpu.memory_space<vmem>>, vector<8x128xf32>
    tpu.vector_store %arg9[%c0_10, %c0_11], %14 {strides = array<i32>} : memref<8x128xf32, #tpu.memory_space<vmem>>, vector<8x128xf32>,
    %c0_i32_12 = arith.constant 0 : i32
    %16 = arith.cmpi eq, %arg2, %c0_i32_12 : i32
    %17 = arith.extui %16 : i1 to i32
    %c0_i32_13 = arith.constant 0 : i32
    %18 = arith.cmpi ne, %17, %c0_i32_13 : i32
    scf.if %18 {
      %c0_14 = arith.constant 0 : index
      %c0_15 = arith.constant 0 : index
      %19 = vector.load %arg9[%c0_14, %c0_15] : memref<8x128xf32, #tpu.memory_space<vmem>>, vector<8x128xf32>
      %c0_16 = arith.constant 0 : index
      %c0_17 = arith.constant 0 : index
      %20 = vector.load %arg7[%c0_16, %c0_17] : memref<1x128xf32, #tpu.memory_space<vmem>>, vector<1x128xf32>
      %21 = vector.broadcast %20 : vector<1x128xf32> to vector<8x128xf32>
      %22 = arith.addf %19, %21 : vector<8x128xf32>
      %c0_18 = arith.constant 0 : index
      %c0_19 = arith.constant 0 : index
      %23 = vector.load %arg8[%c0_18, %c0_19] : memref<8x128xf32, #tpu.memory_space<vmem>>, vector<8x128xf32>
      tpu.vector_store %arg8[%c0_18, %c0_19], %22 {strides = array<i32>} : memref<8x128xf32, #tpu.memory_space<vmem>>, vector<8x128xf32>,
    } else {
    }
    return
  }
  func.func @transform_0(%arg0: i32, %arg1: i32, %arg2: i32) -> (i32, i32) {
    %c0_i32 = arith.constant 0 : i32
    return %arg0, %arg2 : i32, i32
  }
  func.func @transform_1(%arg0: i32, %arg1: i32, %arg2: i32) -> (i32, i32) {
    %c0_i32 = arith.constant 0 : i32
    %c0_i32_0 = arith.constant 0 : i32
    return %c0_i32, %arg2 : i32, i32
  }
  func.func @transform_2(%arg0: i32, %arg1: i32, %arg2: i32) -> (i32, i32) {
    %c0_i32 = arith.constant 0 : i32
    %c0_i32_0 = arith.constant 0 : i32
    return %c0_i32, %arg2 : i32, i32
  }
  func.func @transform_3(%arg0: i32, %arg1: i32, %arg2: i32) -> (i32, i32) {
    %c0_i32 = arith.constant 0 : i32
    return %arg2, %arg1 : i32, i32
  }
  func.func @transform_4(%arg0: i32, %arg1: i32, %arg2: i32) -> (i32, i32) {
    %c0_i32 = arith.constant 0 : i32
    %c0_i32_0 = arith.constant 0 : i32
    return %c0_i32, %arg1 : i32, i32
  }
  func.func @transform_5(%arg0: i32, %arg1: i32, %arg2: i32) -> (i32, i32) {
    %c0_i32 = arith.constant 0 : i32
    return %arg0, %arg1 : i32, i32
  }
}

</mosaic_0001>

<bundles_post_ra>
// kernel: preprocessing_wrapper_forward.1
= control target key start
LH: loop header
LB: loop body
LE: loop exit
PB: predicated region body
PF: predicated region fallthrough
CT: control target
= control target key end

     0   :  { %10 = vsyncpa [#allocation4], 0  ;;  %s1193_s0 = inlined_call_operand.vmem [shape: f32[2,768], index: 0, kind: input, shape index: {}]   ;;  %s1194_s1 = inlined_call_operand.vmem [shape: f32[1,768], index: 1, kind: input, shape index: {}]   ;;  %s1195_s2 = inlined_call_operand.vmem [shape: f32[1,768], index: 2, kind: input, shape index: {}]   ;;  %s1196_s3 = inlined_call_operand.hbm [shape: bf16[768,128], index: 3, kind: input, shape index: {}]   ;;  %s1197_s4 = inlined_call_operand.vmem [shape: f32[1,128], index: 4, kind: input, shape index: {}]   ;;  %s1198_s5 = inlined_call_operand.hbm [shape: f32[2,128], index: 5, kind: output, shape index: {}]  }
   0x1   :  { %11 = vsyncpa [#allocation5], 0  ;;  %s1070_s18 = smov [#allocation3]   ;;  %s1022_s22 = scalar_lea.hbm %s1196_s3, 6144 }
   0x2   :  { %s23_s19 = sshll.u32 %s1070_s18, 4  ;;  %p1023_p0 = scmp.ne.s32.totalorder %s1196_s3, %s1022_s22  ;;  %s24_s19 = int_to_ptr.vmem [resolvable:$true] %s23_s19 }
   0x3   :  { %p1026_p1 = scmp.lt.u32.totalorder %s1022_s22, %s1196_s3 }
   0x5   :  { %p1028_p2 = pnand %p1026_p1, %p1023_p0 }
   0x7   :  { %1031 = shalt.err (!%p1028_p2)
}
   0x8   :  { %s1032_s27 = scalar_lea.vmem %s24_s19, 6144  ;;  %p1037_p4 = scmp.lt.s32.totalorder %s24_s19, %s24_s19 }
   0x9   :  { %p1033_p3 = scmp.ne.s32.totalorder %s24_s19, %s1032_s27  ;;  %p1038_p5 = scmp.lt.s32.totalorder %s1032_s27, %s1032_s27 }
   0xb   :  { %p1039_p6 = por %p1038_p5, %p1037_p4 }
   0xd   :  { %p1040_p7 = pnand %p1039_p6, %p1033_p3 }
   0xf   :  { %1043 = shalt.err (!%p1040_p7)
}
  0x10   :  { %s1071_s28 = smov 64   ;;  %s1072_s29 = smov 4  }
  0x11   :  { %29 = dma.hbm_to_vmem [thread:$0]  %s1196_s3, 6144, %s24_s19, [#allocation4], %s1071_s28, %s1071_s28, %s1072_s29  }
  0x12   :  { %1066 = dma.done.wait [#allocation4], 6144  }
  0x13   :  { %1067 = vsyncadd [#allocation4], 4294961152  ;;  %v974_v0 = vld [vmem:[#allocation3 + $0x40] sm:$0xff]   ;;  %v978_v4 = vld [vmem:[#allocation3 + $0x48] sm:$0xff]   ;;  %v51_v20 = vlaneseq  ;;  %v1073_v28 = vmov 1983009808  }
  0x14   :  { %v975_v1 = vld [vmem:[#allocation3 + $0xc0] sm:$0xff]   ;;  %901 = vmatprep.subr.bf16.mxu0 %v974_v0  ;;  %v979_v5 = vld [vmem:[#allocation3 + $0xc8] sm:$0xff]   ;;  %v982_v8 = vld [vmem:[#allocation3 + $0x50] sm:$0xff]   ;;  %v80_v29 = vunpack.c.l.s4 %v1073_v28 }
  0x15   :  { %v976_v2 = vld [vmem:[#allocation3] sm:$0xff]   ;;  %923 = vmatprep.subr.bf16.mxu1 %v975_v1  ;;  %v980_v6 = vld [vmem:[#allocation3 + $0x8] sm:$0xff]   ;;  %v983_v9 = vld [vmem:[#allocation3 + $0xd0] sm:$0xff]   ;;  %v1119_v25 = vshrl.u32 %v51_v20, 7 }
  0x16   :  { %v977_v3 = vld [vmem:[#allocation3 + $0x80] sm:$0xff]   ;;  %902 = vmatpush3.bf16.msra.mxu0 %v976_v2  ;;  %v981_v7 = vld [vmem:[#allocation3 + $0x88] sm:$0xff]   ;;  %v984_v10 = vld [vmem:[#allocation3 + $0x10] sm:$0xff]   ;;  %v81_v37 = vunpack.c.0.s8 %v80_v29 }
  0x17   :  { %924 = vmatpush3.bf16.msra.mxu1 %v977_v3  ;;  %903 = vmatprep.subr.bf16.mxu0 %v978_v4  ;;  %v985_v11 = vld [vmem:[#allocation3 + $0x90] sm:$0xff]   ;;  %v986_v12 = vld [vmem:[#allocation3 + $0x58] sm:$0xff]   ;;  %v990_v16 = vld [vmem:[#allocation3 + $0x60] sm:$0xff]   ;;  %v53_v32 = vsub.s32 0, %v1119_v25  ;;  %v57_v34 = vsub.s32 1, %v1119_v25  ;;  %v61_v36 = vsub.s32 2, %v1119_v25 }
  0x18   :  { %925 = vmatprep.subr.bf16.mxu1 %v979_v5  ;;  %v987_v13 = vld [vmem:[#allocation3 + $0xd8] sm:$0xff]   ;;  %v991_v17 = vld [vmem:[#allocation3 + $0xe0] sm:$0xff]   ;;  %v994_v21 = vld [vmem:[#allocation3 + $0x68] sm:$0xff]   ;;  %v65_v39 = vsub.s32 3, %v1119_v25  ;;  %v1129_v42 = vsub.s32 %v81_v37, %v1119_v25  ;;  %v69_v44 = vsub.s32 4, %v1119_v25  ;;  %v73_v45 = vsub.s32 5, %v1119_v25 }
  0x19   :  { %v988_v14 = vld [vmem:[#allocation3 + $0x18] sm:$0xff]   ;;  %v992_v18 = vld [vmem:[#allocation3 + $0x20] sm:$0xff]   ;;  %v995_v22 = vld [vmem:[#allocation3 + $0xe8] sm:$0xff]  }
  0x1a   :  { %904 = vmatpush3.bf16.msra.mxu0 %v980_v6  ;;  %v989_v15 = vld [vmem:[#allocation3 + $0x98] sm:$0xff]   ;;  %v993_v19 = vld [vmem:[#allocation3 + $0xa0] sm:$0xff]   ;;  %v996_v23 = vld [vmem:[#allocation3 + $0x28] sm:$0xff]  }
  0x1b   :  { %926 = vmatpush3.bf16.msra.mxu1 %v981_v7  ;;  %905 = vmatprep.subr.bf16.mxu0 %v982_v8  ;;  %v997_v24 = vld [vmem:[#allocation3 + $0xa8] sm:$0xff]   ;;  %v998_v26 = vld [vmem:[#allocation3 + $0x70] sm:$0xff]   ;;  %v1002_v33 = vld [vmem:[#allocation3 + $0x78] sm:$0xff]  }
  0x1c   :  { %927 = vmatprep.subr.bf16.mxu1 %v983_v9  ;;  %v999_v27 = vld [vmem:[#allocation3 + $0xf0] sm:$0xff]   ;;  %v1003_v35 = vld [vmem:[#allocation3 + $0xf8] sm:$0xff]   ;;  %v49_v41 = vld [vmem:[%s1194_s1] sm:$0x3f] }
  0x1d   :  { %v1000_v30 = vld [vmem:[#allocation3 + $0x30] sm:$0xff]   ;;  %v1004_v38 = vld [vmem:[#allocation3 + $0x38] sm:$0xff]   ;;  %v145_v43 = vld [vmem:[%s1195_s2] sm:$0x3f]  ;;  %v54_v46 = vrot.slane %v49_v41, %v53_v32  ;;  %v58_v47 = vrot.slane %v49_v41, %v57_v34  ;;  %v62_v48 = vrot.slane %v49_v41, %v61_v36  ;;  %v66_v49 = vrot.slane %v49_v41, %v65_v39 }
  0x1e   :  { %906 = vmatpush3.bf16.msra.mxu0 %v984_v10  ;;  %v1001_v31 = vld [vmem:[#allocation3 + $0xb0] sm:$0xff]   ;;  %v1005_v40 = vld [vmem:[#allocation3 + $0xb8] sm:$0xff]   ;;  %v1006_v50 = vld [vmem:[#allocation3 + $0x140] sm:$0xff]   ;;  %v150_v51 = vrot.slane %v145_v43, %v53_v32  ;;  %v154_v52 = vrot.slane %v145_v43, %v57_v34  ;;  %v158_v53 = vrot.slane %v145_v43, %v61_v36  ;;  %v162_v54 = vrot.slane %v145_v43, %v65_v39 }
  0x1f   :  { %928 = vmatpush3.bf16.msra.mxu1 %v985_v11  ;;  %907 = vmatprep.subr.bf16.mxu0 %v986_v12  ;;  %v75_v55 = vcombine.low %v54_v46, %v58_v47  ;;  %v76_v56 = vcombine.high %v54_v46, %v58_v47  ;;  %v77_v57 = vcombine.low %v62_v48, %v66_v49  ;;  %v41_v59 = vld [vmem:[%s1193_s0] sm:$0xff]  ;;  %v43_v60 = vld [vmem:[%s1193_s0 + $0xc] sm:$0xff]  ;;  %v45_v1 = vld [vmem:[%s1193_s0 + $0x18] sm:$0xff] }
  0x20   :  { %929 = vmatprep.subr.bf16.mxu1 %v987_v13  ;;  %v78_v58 = vcombine.high %v62_v48, %v66_v49  ;;  %v171_v61 = vcombine.low %v150_v51, %v154_v52  ;;  %v172_v62 = vcombine.high %v150_v51, %v154_v52  ;;  %v173_v63 = vcombine.low %v158_v53, %v162_v54  ;;  %v47_v6 = vld [vmem:[%s1193_s0 + $0x24] sm:$0xff] }
  0x21   :  { %v174_v0 = vcombine.high %v158_v53, %v162_v54  ;;  %v85_v2 = vrot.slane %v75_v55, %v1129_v42  ;;  %v92_v3 = vrot.slane %v76_v56, %v1129_v42  ;;  %v99_v4 = vrot.slane %v77_v57, %v1129_v42  ;;  %v42_v55 = vld [vmem:[%s1193_s0 + $0x8] sm:$0xf]  ;;  %v44_v56 = vld [vmem:[%s1193_s0 + $0x14] sm:$0xf]  ;;  %v46_v57 = vld [vmem:[%s1193_s0 + $0x20] sm:$0xf] }
  0x22   :  { %908 = vmatpush3.bf16.msra.mxu0 %v988_v14  ;;  %v106_v5 = vrot.slane %v78_v58, %v1129_v42  ;;  %v181_v7 = vrot.slane %v171_v61, %v1129_v42  ;;  %v188_v8 = vrot.slane %v172_v62, %v1129_v42  ;;  %v195_v9 = vrot.slane %v173_v63, %v1129_v42  ;;  %v48_v58 = vld [vmem:[%s1193_s0 + $0x2c] sm:$0xf] }
  0x23   :  { %930 = vmatpush3.bf16.msra.mxu1 %v989_v15  ;;  %909 = vmatprep.subr.bf16.mxu0 %v990_v16  ;;  %v202_v10 = vrot.slane %v174_v0, %v1129_v42  ;;  %v107_v11 = vcombine.low %v85_v2, %v99_v4  ;;  %v108_v12 = vcombine.high %v85_v2, %v99_v4  ;;  %v1008_v4 = vld [vmem:[#allocation3 + $0x148] sm:$0xff]  }
  0x24   :  { %931 = vmatprep.subr.bf16.mxu1 %v991_v17  ;;  %v109_v13 = vcombine.low %v92_v3, %v106_v5  ;;  %v110_v14 = vcombine.high %v92_v3, %v106_v5  ;;  %v203_v15 = vcombine.low %v181_v7, %v195_v9  ;;  %v204_v16 = vcombine.high %v181_v7, %v195_v9  ;;  %v1007_v3 = vld [vmem:[#allocation3 + $0x100] sm:$0xff]  }
  0x25   :  { %v205_v17 = vcombine.low %v188_v8, %v202_v10  ;;  %v139_v20 = vmul.f32 %v108_v12, %v43_v60  ;;  %v166_v25 = vrot.slane %v145_v43, %v69_v44  ;;  %v1010_v12 = vld [vmem:[#allocation3 + $0x150] sm:$0xff]  }
  0x26   :  { %910 = vmatpush3.bf16.msra.mxu0 %v992_v18  ;;  %v206_v18 = vcombine.high %v188_v8, %v202_v10 }
  0x27   :  { %932 = vmatpush3.bf16.msra.mxu1 %v993_v19  ;;  %911 = vmatprep.subr.bf16.mxu0 %v994_v21  ;;  %v137_v19 = vmul.f32 %v107_v11, %v41_v59  ;;  %v141_v21 = vmul.f32 %v109_v13, %v45_v1  ;;  %v235_v28 = vadd.f32 %v204_v16, %v139_v20  ;;  %v1009_v11 = vld [vmem:[#allocation3 + $0x108] sm:$0xff]   ;;  %v1011_v16 = vld [vmem:[#allocation3 + $0x110] sm:$0xff]   ;;  %v1013_v20 = vld [vmem:[#allocation3 + $0x118] sm:$0xff]  }
  0x28   :  { %933 = vmatprep.subr.bf16.mxu1 %v995_v22  ;;  %v143_v22 = vmul.f32 %v110_v14, %v47_v6 }
  0x29   :  { %v237_v29 = vadd.f32 %v205_v17, %v141_v21  ;;  %v1012_v17 = vld [vmem:[#allocation3 + $0x158] sm:$0xff]   ;;  %v1014_v21 = vld [vmem:[#allocation3 + $0x160] sm:$0xff]  }
  0x2a   :  { %912 = vmatpush3.bf16.msra.mxu0 %v996_v23  ;;  %v70_v23 = vrot.slane %v49_v41, %v69_v44 }
  0x2b   :  { %934 = vmatpush3.bf16.msra.mxu1 %v997_v24  ;;  %913 = vmatprep.subr.bf16.mxu0 %v998_v26  ;;  %v74_v24 = vrot.slane %v49_v41, %v73_v45  ;;  %v170_v26 = vrot.slane %v145_v43, %v73_v45 }
  0x2c   :  { %935 = vmatprep.subr.bf16.mxu1 %v999_v27  ;;  %v233_v27 = vadd.f32 %v203_v15, %v137_v19 }
  0x2d   :  { %v112_v32 = vcombine.high %v70_v23, %v74_v24  ;;  %v208_v34 = vcombine.high %v166_v25, %v170_v26 }
  0x2e   :  { %914 = vmatpush3.bf16.msra.mxu0 %v1000_v30  ;;  %v239_v30 = vadd.f32 %v206_v18, %v143_v22  ;;  %v251_v37 = vcombine.high %v233_v27, %v235_v28  ;;  %v1015_v22 = vld [vmem:[#allocation3 + $0x120] sm:$0xff]  }
  0x2f   :  { %936 = vmatpush3.bf16.msra.mxu1 %v1001_v31  ;;  %915 = vmatprep.subr.bf16.mxu0 %v1002_v33  ;;  %v111_v31 = vcombine.low %v70_v23, %v74_v24  ;;  %v207_v33 = vcombine.low %v166_v25, %v170_v26  ;;  %v222_v43 = vrot.slane %v208_v34, %v1129_v42  ;;  %v1016_v23 = vld [vmem:[#allocation3 + $0x168] sm:$0xff]   ;;  %v1018_v25 = vld [vmem:[#allocation3 + $0x170] sm:$0xff]   ;;  %v1020_v26 = vld [vmem:[#allocation3 + $0x178] sm:$0xff]  }
  0x30   :  { %937 = vmatprep.subr.bf16.mxu1 %v1003_v35  ;;  %v250_v35 = vcombine.low %v233_v27, %v235_v28  ;;  %v252_v36 = vcombine.low %v237_v29, %v239_v30  ;;  %v267_v46 = vrot.slane %v251_v37, %v1129_v42  ;;  %v1017_v24 = vld [vmem:[#allocation3 + $0x128] sm:$0xff]   ;;  %v1021_v28 = vld [vmem:[#allocation3 + $0x138] sm:$0xff]  }
  0x31   :  { %v119_v39 = vrot.slane %v111_v31, %v1129_v42  ;;  %v215_v41 = vrot.slane %v207_v33, %v1129_v42  ;;  %v224_v62 = vcombine.high %v222_v43, %v222_v43 }
  0x32   :  { %916 = vmatpush3.bf16.msra.mxu0 %v1004_v38  ;;  %v253_v38 = vcombine.high %v237_v29, %v239_v30  ;;  %v260_v44 = vrot.slane %v250_v35, %v1129_v42  ;;  %v274_v45 = vrot.slane %v252_v36, %v1129_v42 }
  0x33   :  { %938 = vmatpush3.bf16.msra.mxu1 %v1005_v40  ;;  %945 = vmatprep.subr.bf16.mxu0 %v1006_v50  ;;  %v126_v40 = vrot.slane %v112_v32, %v1129_v42  ;;  %v127_v48 = vcombine.high %v119_v39, %v119_v39  ;;  %v223_v50 = vcombine.high %v215_v41, %v215_v41 }
  0x34   :  { %v281_v47 = vrot.slane %v253_v38, %v1129_v42  ;;  %v283_v51 = vcombine.high %v260_v44, %v274_v45  ;;  %v282_v53 = vcombine.low %v260_v44, %v274_v45  ;;  %v138_v59 = vmul.f32 %v119_v39, %v42_v55 }
  0x35   :  { %v128_v49 = vcombine.high %v126_v40, %v126_v40  ;;  %v140_v60 = vmul.f32 %v127_v48, %v44_v56  ;;  %v142_v61 = vmul.f32 %v126_v40, %v46_v57 }
  0x36   :  { %v285_v52 = vcombine.high %v267_v46, %v281_v47  ;;  %v284_v54 = vcombine.low %v267_v46, %v281_v47  ;;  %v311_v63 = vpack.c.bf16 %v283_v51, %v283_v51  ;;  %v310_v1 = vpack.c.bf16 %v282_v53, %v282_v53  ;;  %v900_v46 = vld [vmem:[%s1197_s4] ss:$0 sm:$0xff] }
  0x37   :  { %v144_v5 = vmul.f32 %v128_v49, %v48_v58  ;;  %v234_v6 = vadd.f32 %v215_v41, %v138_v59  ;;  %v236_v7 = vadd.f32 %v223_v50, %v140_v60  ;;  %v238_v8 = vadd.f32 %v222_v43, %v142_v61 }
  0x38   :  { %v313_v0 = vpack.c.bf16 %v285_v52, %v285_v52  ;;  %v312_v2 = vpack.c.bf16 %v284_v54, %v284_v54  ;;  %732 = vmatprep.mubr.bf16.mxu0 %v311_v63 }
  0x39   :  { %733 = vmatmul.mubr.bf16.vlgmr.msra.gmra.mrb[0].mxu0 %v310_v1  ;;  %v240_v9 = vadd.f32 %v224_v62, %v144_v5  ;;  %v286_v10 = vcombine.low %v234_v6, %v236_v7 }
  0x3a   :  { %772 = vmatprep.mubr.bf16.mxu1 %v313_v0  ;;  %946 = vmatpush3.bf16.msra.mxu0 %v1007_v3 }
  0x3b   :  { %773 = vmatmul.mubr.bf16.vlgmr.msra.gmra.mrb[0].mxu1 %v312_v2  ;;  %947 = vmatprep.subr.bf16.mxu0 %v1008_v4  ;;  %v287_v13 = vcombine.low %v238_v8, %v240_v9  ;;  %v294_v14 = vrot.slane %v286_v10, %v1129_v42 }
  0x3d   :  { %v301_v15 = vrot.slane %v287_v13, %v1129_v42  ;;  %v1019_v42 = vld [vmem:[#allocation3 + $0x130] sm:$0xff]  }
  0x3e   :  { %948 = vmatpush3.bf16.msra.mxu0 %v1009_v11 }
  0x3f   :  { %949 = vmatprep.subr.bf16.mxu0 %v1010_v12  ;;  %v303_v18 = vcombine.high %v294_v14, %v301_v15  ;;  %v302_v27 = vcombine.low %v294_v14, %v301_v15 }
  0x41   :  { %v315_v19 = vpack.c.bf16 %v303_v18, %v303_v18  ;;  %v314_v29 = vpack.c.bf16 %v302_v27, %v302_v27 }
  0x42   :  { %950 = vmatpush3.bf16.msra.mxu0 %v1011_v16 }
  0x43   :  { %951 = vmatprep.subr.bf16.mxu0 %v1012_v17  ;;  %812 = vmatprep.mubr.bf16.mxu0 %v315_v19 }
  0x46   :  { %952 = vmatpush3.bf16.msra.mxu0 %v1013_v20 }
  0x47   :  { %953 = vmatprep.subr.bf16.mxu0 %v1014_v21 }
  0x4a   :  { %954 = vmatpush3.bf16.msra.mxu0 %v1015_v22 }
  0x4b   :  { %955 = vmatprep.subr.bf16.mxu0 %v1016_v23 }
  0x4e   :  { %956 = vmatpush3.bf16.msra.mxu0 %v1017_v24 }
  0x4f   :  { %957 = vmatprep.subr.bf16.mxu0 %v1018_v25 }
  0x52   :  { %958 = vmatpush3.bf16.msra.mxu0 %v1019_v42 }
  0x53   :  { %959 = vmatprep.subr.bf16.mxu0 %v1020_v26 }
  0x56   :  { %960 = vmatpush3.bf16.msra.mxu0 %v1021_v28 }
  0x59   :  { %813 = vmatmul.mubr.bf16.vlgmr.msra.gmra.mrb[4].mxu0 %v314_v29 }
 0x10c   :  { %v917_v30 = vpop.f32.mrb[0].mxu0 }
 0x10d   :  { %v918_v32 = vpop.f32.mrb[1].mxu0 }
 0x10e   :  { %v939_v31 = vpop.f32.mrb[0].mxu1  ;;  %v919_v34 = vadd.f32 %v918_v32, %v917_v30  ;;  %v920_v36 = vpop.f32.mrb[2].mxu0 }
 0x10f   :  { %v940_v33 = vpop.f32.mrb[1].mxu1  ;;  %v921_v38 = vpop.f32.mrb[3].mxu0 }
 0x110   :  { %v941_v35 = vadd.f32 %v940_v33, %v939_v31  ;;  %v942_v37 = vpop.f32.mrb[2].mxu1 }
 0x111   :  { %v943_v39 = vpop.f32.mrb[3].mxu1 }
 0x112   :  { %v775_v40 = vadd.f32 %v941_v35, %v919_v34 }
 0x12c   :  { %v961_v41 = vpop.f32.mrb[4].mxu0 }
 0x12d   :  { %v962_v43 = vpop.f32.mrb[5].mxu0 }
 0x12e   :  { %v963_v44 = vadd.f32 %v962_v43, %v961_v41  ;;  %v964_v45 = vpop.f32.mrb[6].mxu0 }
 0x12f   :  { %v965_v47 = vpop.f32.mrb[7].mxu0 }
 0x130   :  { %v815_v48 = vadd.f32 %v963_v44, %v775_v40 }
 0x132   :  { %v833_v49 = vadd.f32 %v900_v46, %v815_v48 }
 0x134   :  { %834 = vst [vmem:[#allocation6] sm:$0xff] %v833_v49 }
 0x135   :  { %839 = vsyncadd [#allocation5], 96  ;;  %s1074_s25 = smov [#allocation6]  }
 0x136   :  { %s840_s26 = sshll.u32 %s1074_s25, 4  ;;  %s841_s26 = int_to_ptr.vmem [resolvable:$true] %s840_s26 }
 0x137   :  { %s1044_s27 = scalar_lea.vmem %s841_s26, 32  ;;  %s1048_s28 = scalar_lea.vmem %s841_s26, 128 }
 0x138   :  { %p1045_p8 = scmp.ne.s32.totalorder %s841_s26, %s1044_s27  ;;  %p1049_p9 = scmp.lt.s32.totalorder %s841_s26, %s841_s26 }
 0x139   :  { %p1050_p10 = scmp.lt.s32.totalorder %s1048_s28, %s1044_s27 }
 0x13b   :  { %p1051_p11 = por %p1050_p10, %p1049_p9 }
 0x13d   :  { %p1052_p12 = pnand %p1051_p11, %p1045_p8 }
 0x13f   :  { %1055 = shalt.err (!%p1052_p12)
}
 0x140   :  { %s1056_s4 = scalar_lea.hbm %s1198_s5, 32 }
 0x141   :  { %p1057_p13 = scmp.ne.s32.totalorder %s1198_s5, %s1056_s4  ;;  %p1060_p0 = scmp.lt.u32.totalorder %s1056_s4, %s1198_s5 }
 0x143   :  { %p1062_p1 = pnand %p1060_p0, %p1057_p13 }
 0x145   :  { %1065 = shalt.err (!%p1062_p1)
}
 0x146   :  { %s1075_s9 = smov 32   ;;  %s1076_s1 = smov 2  }
 0x147   :  { %846 = dma.vmem_to_hbm [thread:$0]  %s841_s26, 32, %s1198_s5, [#allocation5], %s1075_s9, %s1075_s9, %s1076_s1  }
 0x148   :  { %1068 = dma.done.wait [#allocation5], 128  }
 0x149   :  { %1069 = vsyncadd [#allocation5], 4294967168 }
 0x14a   :  { %850 = vsyncpa [#allocation4], 1 }
 0x14b   :  { %851 = vsyncpa [#allocation5], 1 }

</bundles_post_ra>
